<compile_context>
chip_gen: v7x
topology: tpu7x:2x2x1
jax: 0.10.0
libtpu: 0.0.40
codegen_flags: <defaults>
</compile_context>

<pallas_src>
import math

import jax
import jax.numpy as jnp
import numpy as np
from jax.experimental import pallas as pl
from jax.experimental.pallas import tpu as pltpu


# ----------------------------------------------------------------------------
# Rotary position embedding tables (glue, plain JAX / numpy)
# ----------------------------------------------------------------------------
def build_rotary_pos_embed(feat_shape, head_dim, max_res=224.0):
    """timm-style rotary embedding for 2D feature maps.

    Returns sin, cos of shape (H*W, head_dim)."""
    num_bands = head_dim // 4
    exps = jnp.linspace(0.0, math.log2(max_res) - 1.0, num_bands)
    bands = (2.0 ** exps) * math.pi                                   # (nb,)
    ranges = [jnp.linspace(-1.0, 1.0, s) for s in feat_shape]
    grid = jnp.stack(jnp.meshgrid(*ranges, indexing="ij"), axis=-1)   # (H, W, 2)
    pos = grid[..., None] * bands                                     # (H, W, 2, nb)
    n = feat_shape[0] * feat_shape[1]
    sin = jnp.repeat(jnp.sin(pos).reshape(n, -1), 2, axis=-1)         # (N, head_dim)
    cos = jnp.repeat(jnp.cos(pos).reshape(n, -1), 2, axis=-1)
    return sin.astype(jnp.float32), cos.astype(jnp.float32)


def _pair_swap_sign_matrix(dim):
    """R2 with (x @ R2)[2i] = x[2i+1], (x @ R2)[2i+1] = -x[2i]  (== -rot(x))."""
    r = np.zeros((dim, dim), np.float32)
    for i in range(dim // 2):
        r[2 * i + 1, 2 * i] = 1.0
        r[2 * i, 2 * i + 1] = -1.0
    return r


# ----------------------------------------------------------------------------
# Pallas kernel
# ----------------------------------------------------------------------------
def _make_kernel(batch_tile, n_tok, embed_dim):
    Bt, N, E = batch_tile, n_tok, embed_dim

    def kernel(tok_ref, wkv_ref, bkv_ref, wcls_ref, bcls_ref,
               cos_ref, sin_ref, seg_ref, segt_ref, wproj_ref, bproj_ref,
               o_ref):
        x = tok_ref[...]                                              # (Bt*N, C) bf16

        # Spatial K/V projection for all Bt elements: one wide bf16 MXU matmul.
        kv = jnp.dot(x, wkv_ref[...],
                     preferred_element_type=jnp.float32) + bkv_ref[...]   # (Bt*N, 2E)

        # Class (mean) token q / k / v / q2 for all Bt elements at once.
        x_f32 = x.astype(jnp.float32)
        means = [jnp.mean(x_f32[i * N:(i + 1) * N, :], axis=0, keepdims=True)
                 for i in range(Bt)]
        mean_all = jnp.concatenate(means, axis=0)                     # (Bt, C)
        cls = jnp.dot(mean_all.astype(jnp.bfloat16), wcls_ref[...],
                      preferred_element_type=jnp.float32) + bcls_ref[...]  # (Bt, 4E)

        cos = cos_ref[...]                                            # (N, E)
        sin = sin_ref[...]                                            # (N, E)
        seg = seg_ref[...]                                            # (E, H) * scale
        segt = segt_ref[...]                                          # (H, E)

        ctx_rows = []
        for i in range(Bt):                                           # static unroll
            k_sp = kv[i * N:(i + 1) * N, 0:E]                         # (N, E)
            v_sp = kv[i * N:(i + 1) * N, E:2 * E]                     # (N, E)
            q    = cls[i:i + 1, 0:E]                                  # (1, E)
            kcls = cls[i:i + 1, E:2 * E]
            vcls = cls[i:i + 1, 2 * E:3 * E]
            q2   = cls[i:i + 1, 3 * E:4 * E]                          # signed pair-swap of q

            # rotary folded into the (single) class-token query; VPU only.
            qmod = q * cos + q2 * sin                                 # (N, E)
            s_sp = jnp.dot(k_sp * qmod, seg,
                           preferred_element_type=jnp.float32)        # (N, H)
            s_cl = jnp.dot(kcls * q, seg,
                           preferred_element_type=jnp.float32)        # (1, H)

            # softmax over the N+1 keys per head (class key handled separately)
            m = jnp.maximum(jnp.max(s_sp, axis=0, keepdims=True), s_cl)   # (1, H)
            p_sp = jnp.exp(s_sp - m)                                  # (N, H)
            p_cl = jnp.exp(s_cl - m)                                  # (1, H)
            inv = pl.reciprocal(jnp.sum(p_sp, axis=0, keepdims=True) + p_cl,
                                approx=True)                          # (1, H)

            # weighted value sum -> one (1, E) context row per element
            w_sp = jnp.dot(p_sp, segt, preferred_element_type=jnp.float32)   # (N, E)
            ctx = jnp.sum(v_sp * w_sp, axis=0, keepdims=True)                # (1, E)
            ctx = ctx + vcls * jnp.dot(p_cl, segt, preferred_element_type=jnp.float32)
            ctx = ctx * jnp.dot(inv, segt, preferred_element_type=jnp.float32)
            ctx_rows.append(ctx)

        ctx_all = jnp.concatenate(ctx_rows, axis=0)                   # (Bt, E)
        y = jnp.dot(ctx_all.astype(jnp.bfloat16), wproj_ref[...],
                    preferred_element_type=jnp.float32) + bproj_ref[...]    # (Bt, out)
        o_ref[:, 0, :] = y.astype(o_ref.dtype)

    return kernel


# ----------------------------------------------------------------------------
# Wrapper
# ----------------------------------------------------------------------------
def _pick_batch_tile(b):
    if b <= 1:
        return 1
    for bt in (8, 4, 2, 1):                 # prefer larger Bt, keep >= 2 grid steps
        if b % bt == 0 and b // bt >= 2:
            return bt
    return 1


def rot_attention_pool2d(x, wqkv, bqkv, wproj, bproj, sin_emb, cos_emb, num_heads):
    B, C, H, W = x.shape
    n = H * W
    E = wqkv.shape[1] // 3
    head_dim = E // num_heads
    out_features = wproj.shape[1]
    scale = head_dim ** -0.5

    bt = _pick_batch_tile(B)
    grid = (B // bt,)

    # tokens: (B, C, H, W) -> (B*N, C) channel-last, bf16 MXU operands
    tokens = x.reshape(B, C, n).transpose(0, 2, 1).reshape(B * n, C)
    tokens = tokens.astype(jnp.bfloat16)

    # weight prep (one time, plain JAX): split qkv, fold the rotary pair-swap
    # of the class query into extra projection columns (Wq @ R2).
    wq, wk, wv = wqkv[:, :E], wqkv[:, E:2 * E], wqkv[:, 2 * E:]
    bq, bk, bv = bqkv[:E], bqkv[E:2 * E], bqkv[2 * E:]
    r2 = jnp.asarray(_pair_swap_sign_matrix(E))
    wkv_b = jnp.concatenate([wk, wv], axis=1).astype(jnp.bfloat16)              # (C, 2E)
    bkv_b = jnp.concatenate([bk, bv]).reshape(1, 2 * E).astype(jnp.float32)
    wcls_b = jnp.concatenate([wq, wk, wv, wq @ r2], axis=1).astype(jnp.bfloat16)  # (C, 4E)
    bcls_b = jnp.concatenate([bq, bk, bv, bq @ r2]).reshape(1, 4 * E).astype(jnp.float32)
    wproj_b = wproj.astype(jnp.bfloat16)
    bproj_b = bproj.reshape(1, -1).astype(jnp.float32)

    # rotary tables tiled to the full embed width (identical per head)
    cos_t = jnp.tile(cos_emb, (1, num_heads)).astype(jnp.float32)               # (N, E)
    sin_t = jnp.tile(sin_emb, (1, num_heads)).astype(jnp.float32)               # (N, E)

    # per-head segment matrices: lanes->heads reduce (scale baked in) and
    # heads->lanes broadcast.
    lane_head = np.arange(E) // head_dim
    seg_np = np.zeros((E, num_heads), np.float32)
    seg_np[np.arange(E), lane_head] = scale
    segt_np = np.zeros((num_heads, E), np.float32)
    segt_np[lane_head, np.arange(E)] = 1.0
    seg = jnp.asarray(seg_np)
    segt = jnp.asarray(segt_np)

    kernel = _make_kernel(bt, n, E)

    out = pl.pallas_call(
        kernel,
        out_shape=jax.ShapeDtypeStruct((B, 1, out_features), x.dtype),
        grid_spec=pltpu.PrefetchScalarGridSpec(
            num_scalar_prefetch=0,
            grid=grid,
            in_specs=[
                pl.BlockSpec((bt * n, C), lambda b: (b, 0)),           # tokens (blocked)
                pl.BlockSpec((C, 2 * E), lambda b: (0, 0)),            # Wkv
                pl.BlockSpec((1, 2 * E), lambda b: (0, 0)),            # bkv
                pl.BlockSpec((C, 4 * E), lambda b: (0, 0)),            # Wcls (q,k,v,q2)
                pl.BlockSpec((1, 4 * E), lambda b: (0, 0)),            # bcls
                pl.BlockSpec((n, E), lambda b: (0, 0)),                # cos (tiled)
                pl.BlockSpec((n, E), lambda b: (0, 0)),                # sin (tiled)
                pl.BlockSpec((E, num_heads), lambda b: (0, 0)),        # seg (scaled)
                pl.BlockSpec((num_heads, E), lambda b: (0, 0)),        # segT
                pl.BlockSpec((E, out_features), lambda b: (0, 0)),     # Wproj
                pl.BlockSpec((1, out_features), lambda b: (0, 0)),     # bproj
            ],
            out_specs=pl.BlockSpec((bt, 1, out_features), lambda b: (b, 0, 0)),
        ),
        compiler_params=pltpu.CompilerParams(
            dimension_semantics=("parallel",),
            vmem_limit_bytes=32 * 1024 * 1024,
        ),
    )(tokens, wkv_b, bkv_b, wcls_b, bcls_b, cos_t, sin_t, seg, segt,
      wproj_b, bproj_b)

    return out[:, 0, :]


# ----------------------------------------------------------------------------
# Pure-JAX reference (mirrors the torch forward, f32 end-to-end)
# ----------------------------------------------------------------------------
def _rot(t):
    even = t[..., ::2]
    odd = t[..., 1::2]
    return jnp.stack([-odd, even], axis=-1).reshape(t.shape)


def ref_forward(x, wqkv, bqkv, wproj, bproj, sin_emb, cos_emb, num_heads):
    B, C, H, W = x.shape
    n = H * W
    embed_dim = wqkv.shape[1] // 3
    head_dim = embed_dim // num_heads
    scale = head_dim ** -0.5

    t = x.reshape(B, C, n).transpose(0, 2, 1)
    t = jnp.concatenate([t.mean(axis=1, keepdims=True), t], axis=1)
    qkv = t @ wqkv + bqkv
    qkv = qkv.reshape(B, n + 1, 3, num_heads, head_dim).transpose(2, 0, 3, 1, 4)
    q, k, v = qkv[0], qkv[1], qkv[2]

    def apply_rot(z):
        return z * cos_emb + _rot(z) * sin_emb

    q = jnp.concatenate([q[:, :, :1], apply_rot(q[:, :, 1:])], axis=2)
    k = jnp.concatenate([k[:, :, :1], apply_rot(k[:, :, 1:])], axis=2)
    attn = (q @ jnp.swapaxes(k, -2, -1)) * scale
    attn = jax.nn.softmax(attn, axis=-1)
    o = (attn @ v).transpose(0, 2, 1, 3).reshape(B, n + 1, embed_dim)
    y = o @ wproj + bproj
    return y[:, 0]


# ----------------------------------------------------------------------------
if __name__ == "__main__":
    B, C, H, W = 2, 32, 8, 8          # in_features = 32
    num_heads = 4
    embed_dim = C                      # default: embed_dim = in_features
    out_features = C                   # default: out_features = in_features
    head_dim = embed_dim // num_heads  # 8 (divisible by 4 for rotary bands)

    key = jax.random.PRNGKey(0)
    k1, k2, k3, k4 = jax.random.split(key, 4)

    x = jax.random.normal(k1, (B, C, H, W), jnp.float32)

    # deterministic synthetic parameters (torch __init__ shapes, (in, out) layout)
    std = C ** -0.5
    wqkv = std * jax.random.truncated_normal(k2, -2.0, 2.0, (C, 3 * embed_dim), jnp.float32)
    bqkv = jnp.zeros((3 * embed_dim,), jnp.float32)            # nn.init.zeros_
    bound = embed_dim ** -0.5
    wproj = jax.random.uniform(k3, (embed_dim, out_features), jnp.float32, -bound, bound)
    bproj = jax.random.uniform(k4, (out_features,), jnp.float32, -bound, bound)

    sin_emb, cos_emb = build_rotary_pos_embed((H, W), head_dim)

    out = rot_attention_pool2d(x, wqkv, bqkv, wproj, bproj, sin_emb, cos_emb, num_heads)
    out = jax.block_until_ready(out)

    ref = ref_forward(x, wqkv, bqkv, wproj, bproj, sin_emb, cos_emb, num_heads)
    assert out.shape == (B, out_features)
    # bf16 MXU operands (f32 accumulation) -> compare against the f32 reference
    # with a bf16-appropriate tolerance.
    np.testing.assert_allclose(np.asarray(out), np.asarray(ref), rtol=2e-2, atol=2e-2)
    print("KERNEL_OK")
</pallas_src>

<mosaic_0001>
module attributes {stable_mosaic.version = 11 : i64} {
  func.func @kernel(%arg0: i32, %arg1: memref<64x32xbf16, #tpu.memory_space<vmem>>, %arg2: memref<32x64xbf16, #tpu.memory_space<vmem>>, %arg3: memref<1x64xf32, #tpu.memory_space<vmem>>, %arg4: memref<32x128xbf16, #tpu.memory_space<vmem>>, %arg5: memref<1x128xf32, #tpu.memory_space<vmem>>, %arg6: memref<64x32xf32, #tpu.memory_space<vmem>>, %arg7: memref<64x32xf32, #tpu.memory_space<vmem>>, %arg8: memref<32x4xf32, #tpu.memory_space<vmem>>, %arg9: memref<4x32xf32, #tpu.memory_space<vmem>>, %arg10: memref<32x32xbf16, #tpu.memory_space<vmem>>, %arg11: memref<1x32xf32, #tpu.memory_space<vmem>>, %arg12: memref<1x1x32xf32, #tpu.memory_space<vmem>>) attributes {dimension_semantics = [#tpu.dimension_semantics<parallel>], iteration_bounds = array<i64: 2>, scalar_prefetch = 0 : i64, scratch_operands = 0 : i64, tpu.core_type = #tpu.core_type<tc>, window_params = [{transform_indices = @transform_0, window_bounds = array<i64: 64, 32>}, {pipeline_mode = #tpu.pipeline_mode<synchronous>, transform_indices = @transform_1, window_bounds = array<i64: 32, 64>}, {pipeline_mode = #tpu.pipeline_mode<synchronous>, transform_indices = @transform_2, window_bounds = array<i64: 1, 64>}, {pipeline_mode = #tpu.pipeline_mode<synchronous>, transform_indices = @transform_3, window_bounds = array<i64: 32, 128>}, {pipeline_mode = #tpu.pipeline_mode<synchronous>, transform_indices = @transform_4, window_bounds = array<i64: 1, 128>}, {pipeline_mode = #tpu.pipeline_mode<synchronous>, transform_indices = @transform_5, window_bounds = array<i64: 64, 32>}, {pipeline_mode = #tpu.pipeline_mode<synchronous>, transform_indices = @transform_6, window_bounds = array<i64: 64, 32>}, {pipeline_mode = #tpu.pipeline_mode<synchronous>, transform_indices = @transform_7, window_bounds = array<i64: 32, 4>}, {pipeline_mode = #tpu.pipeline_mode<synchronous>, transform_indices = @transform_8, window_bounds = array<i64: 4, 32>}, {pipeline_mode = #tpu.pipeline_mode<synchronous>, transform_indices = @transform_9, window_bounds = array<i64: 32, 32>}, {pipeline_mode = #tpu.pipeline_mode<synchronous>, transform_indices = @transform_10, window_bounds = array<i64: 1, 32>}, {transform_indices = @transform_11, window_bounds = array<i64: 1, 1, 32>}]} {
    %c0 = arith.constant 0 : index
    %c0_0 = arith.constant 0 : index
    %0 = vector.load %arg1[%c0, %c0_0] : memref<64x32xbf16, #tpu.memory_space<vmem>>, vector<64x32xbf16>
    %c0_1 = arith.constant 0 : index
    %c0_2 = arith.constant 0 : index
    %1 = vector.load %arg2[%c0_1, %c0_2] : memref<32x64xbf16, #tpu.memory_space<vmem>>, vector<32x64xbf16>
    %cst = arith.constant dense<0.000000e+00> : vector<64x64xf32>
    %2 = tpu.matmul %0, %1, %cst {dimension_numbers = #tpu.dot_dimension_numbers<[1], [0], [0], [1], [0, 0, 1, 1], [], []>} : vector<64x32xbf16>, vector<32x64xbf16>, vector<64x64xf32> -> vector<64x64xf32>
    %c0_3 = arith.constant 0 : index
    %c0_4 = arith.constant 0 : index
    %3 = vector.load %arg3[%c0_3, %c0_4] : memref<1x64xf32, #tpu.memory_space<vmem>>, vector<1x64xf32>
    %4 = vector.broadcast %3 : vector<1x64xf32> to vector<64x64xf32>
    %5 = arith.addf %2, %4 : vector<64x64xf32>
    %6 = arith.extf %0 : vector<64x32xbf16> to vector<64x32xf32>
    %cst_5 = arith.constant dense<0.000000e+00> : vector<32xf32>
    %7 = vector.multi_reduction <add>, %6, %cst_5 [0] : vector<64x32xf32> to vector<32xf32>
    %8 = vector.shape_cast %7 : vector<32xf32> to vector<1x32xf32>
    %cst_6 = arith.constant 6.400000e+01 : f32
    %9 = vector.broadcast %cst_6 : f32 to vector<1x32xf32>
    %10 = arith.divf %8, %9 : vector<1x32xf32>
    %11 = arith.truncf %10 : vector<1x32xf32> to vector<1x32xbf16>
    %c0_7 = arith.constant 0 : index
    %c0_8 = arith.constant 0 : index
    %12 = vector.load %arg4[%c0_7, %c0_8] : memref<32x128xbf16, #tpu.memory_space<vmem>>, vector<32x128xbf16>
    %cst_9 = arith.constant dense<0.000000e+00> : vector<1x128xf32>
    %13 = tpu.matmul %11, %12, %cst_9 {dimension_numbers = #tpu.dot_dimension_numbers<[1], [0], [0], [1], [0, 0, 1, 1], [], []>} : vector<1x32xbf16>, vector<32x128xbf16>, vector<1x128xf32> -> vector<1x128xf32>
    %c0_10 = arith.constant 0 : index
    %c0_11 = arith.constant 0 : index
    %14 = vector.load %arg5[%c0_10, %c0_11] : memref<1x128xf32, #tpu.memory_space<vmem>>, vector<1x128xf32>
    %15 = arith.addf %13, %14 : vector<1x128xf32>
    %c0_12 = arith.constant 0 : index
    %c0_13 = arith.constant 0 : index
    %16 = vector.load %arg6[%c0_12, %c0_13] : memref<64x32xf32, #tpu.memory_space<vmem>>, vector<64x32xf32>
    %c0_14 = arith.constant 0 : index
    %c0_15 = arith.constant 0 : index
    %17 = vector.load %arg7[%c0_14, %c0_15] : memref<64x32xf32, #tpu.memory_space<vmem>>, vector<64x32xf32>
    %c0_16 = arith.constant 0 : index
    %c0_17 = arith.constant 0 : index
    %18 = vector.load %arg8[%c0_16, %c0_17] : memref<32x4xf32, #tpu.memory_space<vmem>>, vector<32x4xf32>
    %c0_18 = arith.constant 0 : index
    %c0_19 = arith.constant 0 : index
    %19 = vector.load %arg9[%c0_18, %c0_19] : memref<4x32xf32, #tpu.memory_space<vmem>>, vector<4x32xf32>
    %20 = vector.extract_strided_slice %5 {offsets = [0, 0], sizes = [64, 32], strides = [1, 1]} : vector<64x64xf32> to vector<64x32xf32>
    %21 = vector.extract_strided_slice %5 {offsets = [0, 32], sizes = [64, 32], strides = [1, 1]} : vector<64x64xf32> to vector<64x32xf32>
    %22 = vector.extract_strided_slice %15 {offsets = [0, 0], sizes = [1, 32], strides = [1, 1]} : vector<1x128xf32> to vector<1x32xf32>
    %23 = vector.extract_strided_slice %15 {offsets = [0, 32], sizes = [1, 32], strides = [1, 1]} : vector<1x128xf32> to vector<1x32xf32>
    %24 = vector.extract_strided_slice %15 {offsets = [0, 64], sizes = [1, 32], strides = [1, 1]} : vector<1x128xf32> to vector<1x32xf32>
    %25 = vector.extract_strided_slice %15 {offsets = [0, 96], sizes = [1, 32], strides = [1, 1]} : vector<1x128xf32> to vector<1x32xf32>
    %26 = vector.broadcast %22 : vector<1x32xf32> to vector<64x32xf32>
    %27 = arith.mulf %26, %16 : vector<64x32xf32>
    %28 = vector.broadcast %25 : vector<1x32xf32> to vector<64x32xf32>
    %29 = arith.mulf %28, %17 : vector<64x32xf32>
    %30 = arith.addf %27, %29 : vector<64x32xf32>
    %31 = arith.mulf %20, %30 : vector<64x32xf32>
    %cst_20 = arith.constant dense<0.000000e+00> : vector<64x4xf32>
    %32 = tpu.matmul %31, %18, %cst_20 {dimension_numbers = #tpu.dot_dimension_numbers<[1], [0], [0], [1], [0, 0, 1, 1], [], []>} : vector<64x32xf32>, vector<32x4xf32>, vector<64x4xf32> -> vector<64x4xf32>
    %33 = arith.mulf %23, %22 : vector<1x32xf32>
    %cst_21 = arith.constant dense<0.000000e+00> : vector<1x4xf32>
    %34 = tpu.matmul %33, %18, %cst_21 {dimension_numbers = #tpu.dot_dimension_numbers<[1], [0], [0], [1], [0, 0, 1, 1], [], []>} : vector<1x32xf32>, vector<32x4xf32>, vector<1x4xf32> -> vector<1x4xf32>
    %cst_22 = arith.constant dense<0xFF800000> : vector<4xf32>
    %35 = vector.multi_reduction <maximumf>, %32, %cst_22 [0] : vector<64x4xf32> to vector<4xf32>
    %36 = vector.shape_cast %35 : vector<4xf32> to vector<1x4xf32>
    %37 = arith.maximumf %36, %34 : vector<1x4xf32>
    %38 = vector.broadcast %37 : vector<1x4xf32> to vector<64x4xf32>
    %39 = arith.subf %32, %38 : vector<64x4xf32>
    %40 = math.exp %39 : vector<64x4xf32>
    %41 = arith.subf %34, %37 : vector<1x4xf32>
    %42 = math.exp %41 : vector<1x4xf32>
    %cst_23 = arith.constant dense<0.000000e+00> : vector<4xf32>
    %43 = vector.multi_reduction <add>, %40, %cst_23 [0] : vector<64x4xf32> to vector<4xf32>
    %44 = vector.shape_cast %43 : vector<4xf32> to vector<1x4xf32>
    %45 = arith.addf %44, %42 : vector<1x4xf32>
    %46 = tpu.reciprocal %45 {approx = true} : vector<1x4xf32> -> vector<1x4xf32>
    %cst_24 = arith.constant dense<0.000000e+00> : vector<64x32xf32>
    %47 = tpu.matmul %40, %19, %cst_24 {dimension_numbers = #tpu.dot_dimension_numbers<[1], [0], [0], [1], [0, 0, 1, 1], [], []>} : vector<64x4xf32>, vector<4x32xf32>, vector<64x32xf32> -> vector<64x32xf32>
    %48 = arith.mulf %21, %47 : vector<64x32xf32>
    %cst_25 = arith.constant dense<0.000000e+00> : vector<32xf32>
    %49 = vector.multi_reduction <add>, %48, %cst_25 [0] : vector<64x32xf32> to vector<32xf32>
    %50 = vector.shape_cast %49 : vector<32xf32> to vector<1x32xf32>
    %cst_26 = arith.constant dense<0.000000e+00> : vector<1x32xf32>
    %51 = tpu.matmul %42, %19, %cst_26 {dimension_numbers = #tpu.dot_dimension_numbers<[1], [0], [0], [1], [0, 0, 1, 1], [], []>} : vector<1x4xf32>, vector<4x32xf32>, vector<1x32xf32> -> vector<1x32xf32>
    %52 = arith.mulf %24, %51 : vector<1x32xf32>
    %53 = arith.addf %50, %52 : vector<1x32xf32>
    %cst_27 = arith.constant dense<0.000000e+00> : vector<1x32xf32>
    %54 = tpu.matmul %46, %19, %cst_27 {dimension_numbers = #tpu.dot_dimension_numbers<[1], [0], [0], [1], [0, 0, 1, 1], [], []>} : vector<1x4xf32>, vector<4x32xf32>, vector<1x32xf32> -> vector<1x32xf32>
    %55 = arith.mulf %53, %54 : vector<1x32xf32>
    %56 = arith.truncf %55 : vector<1x32xf32> to vector<1x32xbf16>
    %c0_28 = arith.constant 0 : index
    %c0_29 = arith.constant 0 : index
    %57 = vector.load %arg10[%c0_28, %c0_29] : memref<32x32xbf16, #tpu.memory_space<vmem>>, vector<32x32xbf16>
    %cst_30 = arith.constant dense<0.000000e+00> : vector<1x32xf32>
    %58 = tpu.matmul %56, %57, %cst_30 {dimension_numbers = #tpu.dot_dimension_numbers<[1], [0], [0], [1], [0, 0, 1, 1], [], []>} : vector<1x32xbf16>, vector<32x32xbf16>, vector<1x32xf32> -> vector<1x32xf32>
    %c0_31 = arith.constant 0 : index
    %c0_32 = arith.constant 0 : index
    %59 = vector.load %arg11[%c0_31, %c0_32] : memref<1x32xf32, #tpu.memory_space<vmem>>, vector<1x32xf32>
    %60 = arith.addf %58, %59 : vector<1x32xf32>
    %c0_33 = arith.constant 0 : index
    %c0_34 = arith.constant 0 : index
    %c0_35 = arith.constant 0 : index
    %61 = vector.load %arg12[%c0_33, %c0_34, %c0_35] : memref<1x1x32xf32, #tpu.memory_space<vmem>>, vector<1x1x32xf32>
    %62 = vector.shape_cast %61 : vector<1x1x32xf32> to vector<1x32xf32>
    %63 = vector.shape_cast %60 : vector<1x32xf32> to vector<1x1x32xf32>
    tpu.vector_store %arg12[%c0_33, %c0_34, %c0_35], %63 {strides = array<i32>} : memref<1x1x32xf32, #tpu.memory_space<vmem>>, vector<1x1x32xf32>,
    return
  }
  func.func @transform_0(%arg0: i32) -> (i32, i32) {
    %c0_i32 = arith.constant 0 : i32
    %c0_i32_0 = arith.constant 0 : i32
    return %arg0, %c0_i32 : i32, i32
  }
  func.func @transform_1(%arg0: i32) -> (i32, i32) {
    %c0_i32 = arith.constant 0 : i32
    %c0_i32_0 = arith.constant 0 : i32
    %c0_i32_1 = arith.constant 0 : i32
    return %c0_i32, %c0_i32_0 : i32, i32
  }
  func.func @transform_2(%arg0: i32) -> (i32, i32) {
    %c0_i32 = arith.constant 0 : i32
    %c0_i32_0 = arith.constant 0 : i32
    %c0_i32_1 = arith.constant 0 : i32
    return %c0_i32, %c0_i32_0 : i32, i32
  }
  func.func @transform_3(%arg0: i32) -> (i32, i32) {
    %c0_i32 = arith.constant 0 : i32
    %c0_i32_0 = arith.constant 0 : i32
    %c0_i32_1 = arith.constant 0 : i32
    return %c0_i32, %c0_i32_0 : i32, i32
  }
  func.func @transform_4(%arg0: i32) -> (i32, i32) {
    %c0_i32 = arith.constant 0 : i32
    %c0_i32_0 = arith.constant 0 : i32
    %c0_i32_1 = arith.constant 0 : i32
    return %c0_i32, %c0_i32_0 : i32, i32
  }
  func.func @transform_5(%arg0: i32) -> (i32, i32) {
    %c0_i32 = arith.constant 0 : i32
    %c0_i32_0 = arith.constant 0 : i32
    %c0_i32_1 = arith.constant 0 : i32
    return %c0_i32, %c0_i32_0 : i32, i32
  }
  func.func @transform_6(%arg0: i32) -> (i32, i32) {
    %c0_i32 = arith.constant 0 : i32
    %c0_i32_0 = arith.constant 0 : i32
    %c0_i32_1 = arith.constant 0 : i32
    return %c0_i32, %c0_i32_0 : i32, i32
  }
  func.func @transform_7(%arg0: i32) -> (i32, i32) {
    %c0_i32 = arith.constant 0 : i32
    %c0_i32_0 = arith.constant 0 : i32
    %c0_i32_1 = arith.constant 0 : i32
    return %c0_i32, %c0_i32_0 : i32, i32
  }
  func.func @transform_8(%arg0: i32) -> (i32, i32) {
    %c0_i32 = arith.constant 0 : i32
    %c0_i32_0 = arith.constant 0 : i32
    %c0_i32_1 = arith.constant 0 : i32
    return %c0_i32, %c0_i32_0 : i32, i32
  }
  func.func @transform_9(%arg0: i32) -> (i32, i32) {
    %c0_i32 = arith.constant 0 : i32
    %c0_i32_0 = arith.constant 0 : i32
    %c0_i32_1 = arith.constant 0 : i32
    return %c0_i32, %c0_i32_0 : i32, i32
  }
  func.func @transform_10(%arg0: i32) -> (i32, i32) {
    %c0_i32 = arith.constant 0 : i32
    %c0_i32_0 = arith.constant 0 : i32
    %c0_i32_1 = arith.constant 0 : i32
    return %c0_i32, %c0_i32_0 : i32, i32
  }
  func.func @transform_11(%arg0: i32) -> (i32, i32, i32) {
    %c0_i32 = arith.constant 0 : i32
    %c0_i32_0 = arith.constant 0 : i32
    %c0_i32_1 = arith.constant 0 : i32
    return %arg0, %c0_i32, %c0_i32_0 : i32, i32, i32
  }
}

</mosaic_0001>

<bundles_post_ra>
// kernel: tpu_custom_call.1
= control target key start
LH: loop header
LB: loop body
LE: loop exit
PB: predicated region body
PF: predicated region fallthrough
CT: control target
= control target key end

     0   :  { %s2288_s0 = inlined_call_operand.vmem [shape: bf16[128,32], index: 0, kind: input, shape index: {}]   ;;  %s2289_s1 = inlined_call_operand.vmem [shape: bf16[32,64], index: 1, kind: input, shape index: {}]   ;;  %s2290_s2 = inlined_call_operand.vmem [shape: f32[1,64], index: 2, kind: input, shape index: {}]   ;;  %s2291_s3 = inlined_call_operand.vmem [shape: bf16[32,128], index: 3, kind: input, shape index: {}]   ;;  %s2292_s4 = inlined_call_operand.vmem [shape: f32[1,128], index: 4, kind: input, shape index: {}]   ;;  %s2293_s5 = inlined_call_operand.vmem [shape: f32[64,32], index: 5, kind: input, shape index: {}]   ;;  %s2294_s6 = inlined_call_operand.vmem [shape: f32[64,32], index: 6, kind: input, shape index: {}]   ;;  %s2295_s7 = inlined_call_operand.vmem [shape: f32[32,4], index: 7, kind: input, shape index: {}]   ;;  %s2296_s8 = inlined_call_operand.vmem [shape: f32[4,32], index: 8, kind: input, shape index: {}]   ;;  %s2297_s9 = inlined_call_operand.vmem [shape: bf16[32,32], index: 9, kind: input, shape index: {}]   ;;  %s2298_s10 = inlined_call_operand.vmem [shape: f32[1,32], index: 10, kind: input, shape index: {}]   ;;  %s2299_s11 = inlined_call_operand.hbm [shape: f32[2,1,32], index: 11, kind: output, shape index: {}]  }
   0x1   :  { %2300 = sst [smem:[#allocation6_spill]] %s2289_s1 }
   0x2   :  { %16 = vsyncpa [#allocation3], 0 }
   0x3   :  { %18 = vsyncpa [#allocation3 + $0x1], 0  ;;  %s1906_s17 = smov 0   ;;  %s1908_s18 = smov 0  }
   0x4   :  { %s1910_s19 = smov 0   ;;  %s1912_s20 = smov 0  }
   0x5 LB: > { %s1927_s21 = sadd.s32 4294967295, %s1837_s20   ;;  %s1505_s22 = sadd.s32 4294967294, %s1837_s20   ;;  %s1837_s20 = sphi %s1912_s20, %s2309_s20   ;;  %s1833_s19 = sphi %s1910_s19, %s2308_s19   ;;  %s1829_s18 = sphi %s1908_s18, %s2307_s18   ;;  %s1825_s17 = sphi %s1906_s17, %s2306_s17  }
   0x6   : > { %s1931_s23 = sadd.s32 1, %s1837_s20   ;;  %s267_s24 = sadd.s32 1, %s1833_s19 }
   0x7   : > { %s264_s25 = ssub.s32 %s1837_s20, %s1931_s23  ;;  %p277_p0 = scmp.ne.s32.totalorder %s1833_s19, %s1829_s18 }
   0x8   : > { %p265_p1 = scmp.eq.s32.totalorder %s264_s25, 0  ;;  %p278_p2 = scmp.eq.s32.totalorder %s1927_s21, 1 }
   0x9   : > { %p283_p3 = scmp.ne.s32.totalorder %s1829_s18, %s1825_s17  ;;  %p284_p4 = scmp.eq.s32.totalorder %s1505_s22, 1 }
   0xa   : > { %s1942_s26 = scalar_select %p265_p1, %s1833_s19, %s267_s24  }
   0xb   : > { %p1944_p5 = por %p278_p2, %p277_p0  ;;  %p1948_p6 = por %p284_p4, %p283_p3 }
   0xc   : > { %2301 = sst [smem:[#allocation5_spill]] %s1942_s26  ;;  %p1508_p7 = scmp.ge.s32.totalorder %s1837_s20, 1 }
   0xd   : > { %p341_p8 = scmp.lt.s32.totalorder %s1837_s20, 3 }
   0xf   : > { %p342_p9 = pnand %p1508_p7, %p341_p8 }
  0x10   : > { %s2304_s1 = sld [smem:[#allocation6_spill]] (!%p342_p9)  ;;  %s1509_s12 = sshll.u32 (!%p342_p9), %s1927_s21, 3  ;;  %v618_v2 = vld [vmem:[%s2294_s6 + $0x10] sm:$0xff] (!%p342_p9)  ;;  %v616_v3 = vld [vmem:[%s2294_s6] sm:$0xff] (!%p342_p9)  ;;  %v619_v4 = vld [vmem:[%s2294_s6 + $0x18] sm:$0xff] (!%p342_p9)  ;;  %vm438_vm0 = vcmask (!%p342_p9), 261120   ;;  %v629_v56 = vlaneseq (!%p342_p9) }
  0x11   : > { %345 = sbr.rel (%p342_p9) target bundleno = 1537 (0x601), region = 64  ;;  %p381_p10 = scmp.lt.s32.totalorder (!%p342_p9), %s1509_s12, 15  ;;  %v617_v5 = vld [vmem:[%s2294_s6 + $0x8] sm:$0xff] (!%p342_p9)  ;;  %v1840_v13 = vmov (!%p342_p9), 0.0   ;;  %v1745_v14 = vld [vmem:[%s2291_s3] sm:$0xff] (!%p342_p9)   ;;  %vm1841_vm1 = vmmov (!%p342_p9), 0  }
  0x12   : > { %s1839_s29 = smov (!%p342_p9), 96   ;;  %v621_v21 = vld [vmem:[%s2294_s6 + $0x28] sm:$0xff] (!%p342_p9)  ;;  %v620_v24 = vld [vmem:[%s2294_s6 + $0x20] sm:$0xff] (!%p342_p9)  ;;  %v623_v30 = vld [vmem:[%s2294_s6 + $0x38] sm:$0xff] (!%p342_p9)  ;;  %v2045_v62 = vshrl.u32 (!%p342_p9), %v629_v56, 7  ;;  %vm938_vm2 = vcmask (!%p342_p9), 31744  }
  0x13   : > { %653 = vrot.lane.b32.xlu1 (!%p342_p9), %v618_v2, %s1839_s29  ;;  %649 = vrot.lane.b32.xlu0 (!%p342_p9), %v616_v3, %s1839_s29  ;;  %v1746_v26 = vld [vmem:[%s2291_s3 + $0x8] sm:$0xff] (!%p342_p9)   ;;  %v622_v33 = vld [vmem:[%s2294_s6 + $0x30] sm:$0xff] (!%p342_p9)  ;;  %vm1039_vm3 = vcmask (!%p342_p9), 1043456   ;;  %vm1188_vm4 = vcmask (!%p342_p9), 523520   ;;  %vm1435_vm5 = vcmask (!%p342_p9), 253952   ;;  %s1845_s24 = smov (!%p342_p9), [#allocation2]  }
  0x14   : > { %v624_v52 = vld [vmem:[%s2295_s7] sm:$0xff] (!%p342_p9)  ;;  %v625_v53 = vld [vmem:[%s2295_s7 + $0x8] sm:$0xff] (!%p342_p9)  ;;  %v626_v59 = vld [vmem:[%s2295_s7 + $0x10] sm:$0xff] (!%p342_p9)  ;;  %v631_v3 = vsub.s32 (!%p342_p9), 0, %v2045_v62 }
  0x15   : > { %v1678_v55 = vpack.c.bf16 (!%p342_p9), %v625_v53, %v624_v52  ;;  %v627_v60 = vld [vmem:[%s2295_s7 + $0x18] sm:$0xff] (!%p342_p9)  ;;  %v552_v2 = vld [vmem:[%s2292_s4] sm:$0x1] (!%p342_p9)  ;;  %v613_v53 = vld [vmem:[%s2293_s5 + $0x28] sm:$0xff] (!%p342_p9) }
  0x16   : > { %v1741_v0 = vld [vmem:[%s2304_s1] sm:$0xff] (!%p342_p9)   ;;  %v1742_v1 = vld [vmem:[%s2304_s1 + $0x8] sm:$0xff] (!%p342_p9)   ;;  %s1844_s1 = smov (!%p342_p9), 64  }
  0x17   : > { %1692 = vmatprep.subr.bf16.mxu1 (!%p342_p9), %v1741_v0  ;;  %1595 = vmatprep.subr.bf16.mxu0 (!%p342_p9), %v1741_v0 }
  0x18   : > { %1694 = vmatpush3.bf16.msra.mxu1 %v1741_v0  ;;  %s2311_s12 = smov (!%p381_p10, %s1509_s12), 15  ;;  %1596 = vmatpush3.bf16.msra.mxu0 %v1741_v0  ;;  %v1682_v0 = vpack.c.bf16 %v627_v60, %v626_v59 }
  0x19   : > { %1693 = vmatprep.subr.bf16.mxu1 %v1742_v1  ;;  %1597 = vmatprep.subr.bf16.mxu0 %v1742_v1  ;;  %s1510_s25 = sshll.u32 %s2311_s12, 2  ;;  %s1842_s12 = smov 32  }
  0x1a   : > { %s384_s14 = scalar_lea.vmem %s2288_s0, %s1510_s25  ;;  %655 = vrot.lane.b32.xlu1 %v619_v4, %s1839_s29  ;;  %651 = vrot.lane.b32.xlu0 %v617_v5, %s1839_s29  ;;  %s1779_s25 = sshll.u32 %s1845_s24, 4  ;;  %s1780_s25 = int_to_ptr.vmem [resolvable:$false] %s1779_s25 }
  0x1b   : > { %v387_v6 = vld [vmem:[%s384_s14] sm:$0xff]   ;;  %v389_v7 = vld [vmem:[%s384_s14 + $0x8] sm:$0xff]   ;;  %v391_v8 = vld [vmem:[%s384_s14 + $0x10] sm:$0xff]   ;;  %s1781_s30 = scalar_lea.vmem %s1780_s25, 32 }
  0x1c   : > { %1695 = vmatpush3.bf16.msra.mxu1 %v1742_v1  ;;  %1598 = vmatpush3.bf16.msra.mxu0 %v1742_v1  ;;  %v393_v9 = vld [vmem:[%s384_s14 + $0x18] sm:$0xff]   ;;  %v516_v10 = vunpack.c.l.bf16 %v387_v6  ;;  %v517_v11 = vunpack.c.h.bf16 %v387_v6  ;;  %v518_v12 = vunpack.c.l.bf16 %v389_v7  ;;  %v519_v15 = vunpack.c.h.bf16 %v389_v7  ;;  %s1550_s14 = sshll.u32 %s1927_s21, 4 }
  0x1d   : > { %1607 = vmatprep.subr.bf16.mxu1 %v1840_v13  ;;  %v520_v16 = vunpack.c.l.bf16 %v391_v8  ;;  %1603 = vmatprep.mubr.msk.bf16.mxu1 %vm438_vm0, %v391_v8  ;;  %v521_v22 = vunpack.c.h.bf16 %v391_v8  ;;  %v522_v27 = vunpack.c.l.bf16 %v393_v9  ;;  %v523_v32 = vunpack.c.h.bf16 %v393_v9 }
  0x1e   : > { %v524_v17 = vsel %vm438_vm0, %v516_v10, 0.0  ;;  %v525_v18 = vsel %vm438_vm0, %v517_v11, 0.0  ;;  %v527_v19 = vsel %vm438_vm0, %v518_v12, 0.0  ;;  %v529_v23 = vsel %vm438_vm0, %v519_v15, 0.0  ;;  %659 = vrot.lane.b32.xlu1 %v621_v21, %s1839_s29  ;;  %657 = vrot.lane.b32.xlu0 %v620_v24, %s1839_s29 }
  0x1f   : > { %v526_v20 = vadd.f32 %v525_v18, %v524_v17  ;;  %1604 = vmatmul.mubr.msk.bf16.vlgmr.msra.gmra.mrb[0].mxu1 %vm438_vm0, %v393_v9  ;;  %v531_v28 = vsel %vm438_vm0, %v520_v16, 0.0  ;;  %1599 = vmatprep.mubr.msk.bf16.mxu0 %vm438_vm0, %v387_v6  ;;  %v533_v31 = vsel %vm438_vm0, %v521_v22, 0.0  ;;  %v535_v35 = vsel %vm438_vm0, %v522_v27, 0.0  ;;  %v609_v27 = vld [vmem:[%s2293_s5 + $0x8] sm:$0xff] }
  0x20   : > { %1608 = vmatpush3.bf16.msra.mxu1 %v1745_v14  ;;  %1611 = vmatprep.mubr.msk.bf16.mxu1 %vm1841_vm1, %v1840_v13  ;;  %v537_v37 = vsel %vm438_vm0, %v523_v32, 0.0 }
  0x21   : > { %v528_v25 = vadd.f32 %v527_v19, %v526_v20  ;;  %1609 = vmatprep.subr.bf16.mxu1 %v1840_v13  ;;  %1600 = vmatmul.mubr.msk.bf16.vlgmr.msra.gmra.mrb[0].mxu0 %vm438_vm0, %v389_v7  ;;  %v1843_v19 = vmov 0.0|0.0  }
  0x22   : > { %1643 = vmatprep.mubr.msk.f32.mxu0 %vm1841_vm1, %v1840_v13  ;;  %663 = vrot.lane.b32.xlu1 %v623_v30, %s1839_s29  ;;  %v1511_v30 = vld [vmem:[%s2290_s2] ss:$0 sm:$0xff] }
  0x23   : > { %v530_v29 = vadd.f32 %v529_v23, %v528_v25  ;;  %661 = vrot.lane.b32.xlu0 %v622_v33, %s1839_s29  ;;  %1686 = vmatprep.subr.bf16.mxu0 %v1843_v19 }
  0x24   : > { %1610 = vmatpush3.bf16.msra.mxu1 %v1746_v26  ;;  %1688 = vmatpush3.bf16.msra.mxu0 %v1678_v55 }
  0x25   : > { %v532_v34 = vadd.f32 %v531_v28, %v530_v29  ;;  %1679 = vmatprep.subr.bf16.mxu1 %v1678_v55  ;;  %1689 = vmatprep.subr.bf16.mxu0 %v1843_v19  ;;  %v608_v28 = vld [vmem:[%s2293_s5] sm:$0xff] }
  0x27   : > { %v534_v36 = vadd.f32 %v533_v31, %v532_v34 }
  0x28   : > { %1691 = vmatpush3.bf16.msra.mxu0 %v1682_v0 }
  0x29   : > { %v536_v38 = vadd.f32 %v535_v35, %v534_v36 }
  0x2b   : > { %v538_v39 = vadd.f32 %v537_v37, %v536_v38  ;;  %v611_v37 = vld [vmem:[%s2293_s5 + $0x18] sm:$0xff]  ;;  %v610_v38 = vld [vmem:[%s2293_s5 + $0x10] sm:$0xff] }
  0x2d   : > { %v539_v40 = vrot.slane %v538_v39, 4 }
  0x2f   : > { %v540_v41 = vadd.f32 %v539_v40, %v538_v39 }
  0x31   : > { %v541_v42 = vrot.slane %v540_v41, 2 }
  0x33   : > { %v542_v43 = vadd.f32 %v541_v42, %v540_v41 }
  0x35   : > { %v543_v44 = vrot.slane %v542_v43, 1 }
  0x37   : > { %v544_v45 = vadd.f32 %v543_v44, %v542_v43 }
  0x39   : > { %v546_v46 = vmul.f32 0.015625, %v544_v45 }
  0x3b   : > { %v547_v47 = vpack.c.bf16 %v546_v46, %v546_v46 }
  0x3d   : > { %1612 = vmatmul.mubr.msk.bf16.vlgmr.msra.gmra.mrb[4].mxu1 %vm438_vm0, %v547_v47 }
  0x3e   : > { %1681 = vmatpush3.bf16.msra.mxu1 %v1678_v55 }
  0x3f   : > { %1683 = vmatprep.subr.bf16.mxu1 %v1682_v0 }
  0x42   : > { %1685 = vmatpush3.bf16.msra.mxu1 %v1682_v0  ;;  %v615_v0 = vld [vmem:[%s2293_s5 + $0x38] sm:$0xff] }
  0x43   : > { %1660 = vmatprep.subr.mxu1 %v1840_v13 }
  0x85   : > { %v654_v61 = vpop.permute.xlu1 %653  ;;  %v650_v1 = vpop.permute.xlu0 %649 }
  0x8c   : > { %v656_v5 = vpop.permute.xlu1 %655  ;;  %v652_v8 = vpop.permute.xlu0 %651 }
  0x90   : > { %v660_v15 = vpop.permute.xlu1 %659  ;;  %v658_v16 = vpop.permute.xlu0 %657 }
  0x94   : > { %v664_v22 = vpop.permute.xlu1 %663 }
  0x95   : > { %v662_v23 = vpop.permute.xlu0 %661 }
  0xf2   : > { %v2021_v48 = vpop.f32.mrb[0].mxu1 }
  0xf3   : > { %v2023_v49 = vpop.f32.mrb[1].mxu1 }
  0xf4   : > { %v2025_v50 = vpop.f32.mrb[2].mxu1  ;;  %v2035_v54 = vpop.f32.mrb[0].mxu0 }
  0xf5   : > { %v2027_v51 = vpop.f32.mrb[3].mxu1  ;;  %v485_v57 = vpop.f32.mrb[1].mxu0  ;;  %v2101_v41 = vadd.f32 %v2035_v54, %v1511_v30  ;;  %v612_v54 = vld [vmem:[%s2293_s5 + $0x20] sm:$0xff] }
  0xf6   : > { %v2037_v58 = vpop.f32.mrb[2].mxu0  ;;  %v2087_v31 = vadd.f32 %v1511_v30, %v485_v57 }
  0xf7   : > { %v488_v63 = vpop.f32.mrb[3].mxu0  ;;  %v2104_v42 = vadd.f32 %v2037_v58, %v1511_v30 }
  0xf8   : > { %v2092_v34 = vadd.f32 %v1511_v30, %v488_v63 }
 0x110   : > { %v602_v4 = vpop.f32.mrb[4].mxu1 }
 0x111   : > { %v2052_v6 = vadd.f32 %v602_v4, %v552_v2  ;;  %v1613_v7 = vpop.f32.mrb[5].mxu1  ;;  %v2129_v2 = vadd.f32 %v1511_v30, %v2023_v49  ;;  %v2132_v4 = vadd.f32 %v1511_v30, %v2027_v51  ;;  %v2144_v51 = vadd.f32 %v2025_v50, %v1511_v30 }
 0x112   : > { %v605_v9 = vpop.f32.mrb[6].mxu1 }
 0x113   : > { %v2057_v10 = vrot.slane %v2052_v6, %v631_v3  ;;  %859 = vrot.lane.b32.xlu0 %v2052_v6, %s1842_s12  ;;  %v1614_v11 = vpop.f32.mrb[7].mxu1 }
 0x115   : > { %v674_v12 = vmul.f32 %v652_v8, %v2057_v10  ;;  %v673_v14 = vmul.f32 %v650_v1, %v2057_v10  ;;  %v676_v17 = vmul.f32 %v656_v5, %v2057_v10  ;;  %v675_v18 = vmul.f32 %v654_v61, %v2057_v10  ;;  %v614_v1 = vld [vmem:[%s2293_s5 + $0x30] sm:$0xff] }
 0x116   : > { %v678_v20 = vmul.f32 %v660_v15, %v2057_v10  ;;  %v677_v21 = vmul.f32 %v658_v16, %v2057_v10  ;;  %v680_v24 = vmul.f32 %v664_v22, %v2057_v10  ;;  %v679_v25 = vmul.f32 %v662_v23, %v2057_v10  ;;  %v2158_v22 = vld [vmem:[%s2296_s8] sm:$0xf] }
 0x117   : > { %691 = vrot.lane.b32.xlu0 %v674_v12, %s1842_s12  ;;  %689 = vrot.lane.b32.xlu1 %v673_v14, %s1842_s12  ;;  %v634_v32 = vmul.f32 %v2057_v10, %v609_v27  ;;  %v633_v33 = vmul.f32 %v2057_v10, %v608_v28  ;;  %v636_v45 = vmul.f32 %v2057_v10, %v611_v37 }
 0x118   : > { %v635_v46 = vmul.f32 %v2057_v10, %v610_v38  ;;  %v638_v59 = vmul.f32 %v2057_v10, %v613_v53  ;;  %v637_v60 = vmul.f32 %v2057_v10, %v612_v54  ;;  %v640_v11 = vmul.f32 %v2057_v10, %v615_v0  ;;  %1646 = vmatprep.subr.msk.mxu0 %vm1039_vm3, %v2158_v22 }
 0x119   : > { %v639_v12 = vmul.f32 %v2057_v10, %v614_v1  ;;  %v2141_v15 = vadd.f32 %v2021_v48, %v1511_v30 }
 0x11b   : > { %695 = vrot.lane.b32.xlu0 %v676_v17, %s1842_s12  ;;  %693 = vrot.lane.b32.xlu1 %v675_v18, %s1842_s12 }
 0x11f   : > { %699 = vrot.lane.b32.xlu0 %v678_v20, %s1842_s12  ;;  %697 = vrot.lane.b32.xlu1 %v677_v21, %s1842_s12 }
 0x123   : > { %703 = vrot.lane.b32.xlu0 %v680_v24, %s1842_s12  ;;  %701 = vrot.lane.b32.xlu1 %v679_v25, %s1842_s12 }
 0x185   : > { %v860_v26 = vpop.permute.xlu0 %859 }
 0x186   : > { %v862_v29 = vmul.f32 %v860_v26, %v2052_v6 }
 0x188   : > { %864 = vrot.lane.b32.xlu1 %v862_v29, %s1839_s29 }
 0x189   : > { %v692_v35 = vpop.permute.xlu0 %691  ;;  %v690_v36 = vpop.permute.xlu1 %689 }
 0x18a   : > { %v714_v39 = vadd.f32 %v692_v35, %v634_v32  ;;  %v713_v40 = vadd.f32 %v690_v36, %v633_v33 }
 0x18c   : > { %v721_v43 = vmul.f32 %v713_v40, %v2087_v31  ;;  %v722_v44 = vmul.f32 %v714_v39, %v2092_v34 }
 0x18d   : > { %v696_v47 = vpop.permute.xlu0 %695  ;;  %v694_v52 = vpop.permute.xlu1 %693 }
 0x18e   : > { %v716_v55 = vadd.f32 %v696_v47, %v636_v45  ;;  %v715_v56 = vadd.f32 %v694_v52, %v635_v46  ;;  %1623 = vmatprep.mubr.msk.f32.mxu1 %vm438_vm0, %v721_v43 }
 0x18f   : > { %1624 = vmatmul.mubr.msk.f32.vlgmr.msra.gmra.mrb[8].mxu1 %vm438_vm0, %v722_v44 }
 0x190   : > { %v724_v57 = vmul.f32 %v716_v55, %v2104_v42  ;;  %v723_v58 = vmul.f32 %v715_v56, %v2101_v41  ;;  %1661 = vmatpush3.msk.msra.mxu1 %vm1039_vm3, %v2158_v22 }
 0x191   : > { %v700_v61 = vpop.permute.xlu0 %699  ;;  %v698_v63 = vpop.permute.xlu1 %697  ;;  %1665 = vmatprep.subr.mxu1 %v1840_v13 }
 0x192   : > { %v718_v5 = vadd.f32 %v700_v61, %v638_v59  ;;  %v717_v7 = vadd.f32 %v698_v63, %v637_v60  ;;  %1626 = vmatprep.mubr.msk.f32.mxu1 %vm438_vm0, %v723_v58 }
 0x193   : > { %1627 = vmatmul.mubr.msk.f32.gmra.mrb[10].mxu1 %vm438_vm0, %v724_v57 }
 0x194   : > { %v726_v8 = vmul.f32 %v718_v5, %v2132_v4  ;;  %v725_v9 = vmul.f32 %v717_v7, %v2129_v2 }
 0x195   : > { %v704_v14 = vpop.permute.xlu0 %703  ;;  %v702_v49 = vpop.permute.xlu1 %701 }
 0x196   : > { %v720_v16 = vadd.f32 %v704_v14, %v640_v11  ;;  %v719_v17 = vadd.f32 %v702_v49, %v639_v12  ;;  %1629 = vmatprep.mubr.msk.f32.mxu1 %vm438_vm0, %v725_v9 }
 0x197   : > { %1630 = vmatmul.mubr.msk.f32.gmra.mrb[12].mxu1 %vm438_vm0, %v726_v8 }
 0x198   : > { %v728_v18 = vmul.f32 %v720_v16, %v2144_v51  ;;  %v727_v19 = vmul.f32 %v719_v17, %v2141_v15 }
 0x19a   : > { %1632 = vmatprep.mubr.msk.f32.mxu1 %vm438_vm0, %v727_v19 }
 0x19b   : > { %1633 = vmatmul.mubr.msk.f32.gmra.mrb[14].mxu1 %vm438_vm0, %v728_v18 }
 0x19c   : > { %1662 = vmatprep.mubr.msk.f32.mxu1 %vm1841_vm1, %v1840_v13 }
 0x1fa   : > { %v865_v48 = vpop.permute.xlu1 %864 }
 0x1fb   : > { %1644 = vmatmul.mubr.msk.f32.vlgmr.msra.gmra.mrb[4].mxu0 %vm438_vm0, %v865_v48 }
 0x1fc   : > { %1647 = vmatpush3.msk.msra.mxu0 %vm1039_vm3, %v2158_v22 }
 0x1fd   : > { %1670 = vmatprep.subr.bf16.mxu0 %v1840_v13 }
 0x262   : > { %v1625_v50 = vpop.f32.mrb[8].mxu1 }
 0x263   : > { %v819_v10 = vpop.f32.mrb[9].mxu1  ;;  %v940_v24 = vsel %vm938_vm2, %v1625_v50, -inf }
 0x264   : > { %v939_v27 = vsel %vm938_vm2, %v819_v10, -inf }
 0x266   : > { %v1628_v20 = vpop.f32.mrb[10].mxu1 }
 0x267   : > { %v829_v21 = vpop.f32.mrb[11].mxu1  ;;  %v942_v33 = vsel %vm938_vm2, %v1628_v20, -inf }
 0x268   : > { %v941_v38 = vsel %vm938_vm2, %v829_v21, -inf }
 0x26a   : > { %v1631_v23 = vpop.f32.mrb[12].mxu1 }
 0x26b   : > { %v945_v25 = vsel %vm938_vm2, %v1631_v23, -inf  ;;  %v839_v26 = vpop.f32.mrb[13].mxu1 }
 0x26c   : > { %v946_v28 = vmax.f32 %v940_v24, %v945_v25  ;;  %v943_v29 = vsel %vm938_vm2, %v839_v26, -inf }
 0x26d   : > { %v944_v30 = vmax.f32 %v939_v27, %v943_v29 }
 0x26e   : > { %v1634_v32 = vpop.f32.mrb[14].mxu1 }
 0x26f   : > { %v951_v35 = vmax.f32 %v944_v30, %v946_v28  ;;  %v949_v36 = vsel %vm938_vm2, %v1634_v32, -inf  ;;  %v849_v37 = vpop.f32.mrb[15].mxu1 }
 0x270   : > { %v950_v39 = vmax.f32 %v942_v33, %v949_v36  ;;  %v947_v40 = vsel %vm938_vm2, %v849_v37, -inf }
 0x271   : > { %v948_v43 = vmax.f32 %v941_v38, %v947_v40 }
 0x273   : > { %v952_v44 = vmax.f32 %v948_v43, %v950_v39 }
 0x275   : > { %v953_v45 = vmax.f32 %v951_v35, %v952_v44 }
 0x277   : > { %v954_v46 = vrot.slane %v953_v45, 4 }
 0x279   : > { %v955_v47 = vmax.f32 %v953_v45, %v954_v46 }
 0x27b   : > { %v956_v52 = vrot.slane %v955_v47, 2 }
 0x27d   : > { %v957_v53 = vmax.f32 %v955_v47, %v956_v52 }
 0x27f   : > { %v958_v54 = vrot.slane %v957_v53, 1 }
 0x281   : > { %v959_v55 = vmax.f32 %v957_v53, %v958_v54 }
 0x2ce   : > { %v934_v56 = vpop.f32.mrb[4].mxu0 }
 0x2cf   : > { %v960_v57 = vmax.f32 %v959_v55, %v934_v56  ;;  %v1645_v58 = vpop.f32.mrb[5].mxu0 }
 0x2d1   : > { %v964_v59 = vrot.slane %v960_v57, %v631_v3  ;;  %v989_v60 = vsub.f32 %v934_v56, %v960_v57 }
 0x2d3   : > { %v965_v61 = vsub.f32 %v819_v10, %v964_v59  ;;  %v966_v63 = vsub.f32 %v1625_v50, %v964_v59  ;;  %v967_v0 = vsub.f32 %v829_v21, %v964_v59  ;;  %v968_v1 = vsub.f32 %v1628_v20, %v964_v59 }
 0x2d4   : > { %v969_v5 = vsub.f32 %v839_v26, %v964_v59  ;;  %v970_v7 = vsub.f32 %v1631_v23, %v964_v59  ;;  %v971_v8 = vsub.f32 %v849_v37, %v964_v59  ;;  %v972_v9 = vsub.f32 %v1634_v32, %v964_v59 }
 0x2d5   : > { %v973_v11 = vmul.f32 1.442695, %v965_v61  ;;  %v975_v12 = vmul.f32 1.442695, %v966_v63  ;;  %v977_v14 = vmul.f32 1.442695, %v967_v0 }
 0x2d6   : > { %v979_v49 = vmul.f32 1.442695, %v968_v1  ;;  %v981_v16 = vmul.f32 1.442695, %v969_v5  ;;  %v983_v62 = vmul.f32 1.442695, %v970_v7 }
 0x2d7   : > { %1755 = vpow2.f32 %v973_v11  ;;  %v990_v3 = vmul.f32 1.442695, %v989_v60  ;;  %v985_v17 = vmul.f32 1.442695, %v971_v8  ;;  %v987_v18 = vmul.f32 1.442695, %v972_v9 }
 0x2d8   : > { %1757 = vpow2.f32 %v975_v12  ;;  %v1749_v9 = vld [vmem:[%s2297_s9] sm:$0xff]   ;;  %v1750_v11 = vld [vmem:[%s2297_s9 + $0x8] sm:$0xff]  }
 0x2d9   : > { %1759 = vpow2.f32 %v977_v14 }
 0x2da   : > { %1761 = vpow2.f32 %v979_v49 }
 0x2db   : > { %1763 = vpow2.f32 %v981_v16 }
 0x2dc   : > { %1765 = vpow2.f32 %v983_v62 }
 0x2dd   : > { %1767 = vpow2.f32 %v990_v3 }
 0x2de   : > { %1769 = vpow2.f32 %v985_v17 }
 0x2df   : > { %1771 = vpow2.f32 %v987_v18 }
 0x2e1   : > { %v1756_v19 = vpop.eup %1755 }
 0x2e2   : > { %v1758_v48 = vpop.eup %1757  ;;  %v992_v50 = vsel %vm938_vm2, %v1756_v19, 0.0  ;;  %1648 = vmatprep.mubr.msk.f32.mxu0 %vm938_vm2, %v1756_v19 }
 0x2e3   : > { %v1760_v10 = vpop.eup %1759  ;;  %v993_v20 = vsel %vm938_vm2, %v1758_v48, 0.0  ;;  %1649 = vmatmul.mubr.msk.f32.vlgmr.msra.gmra.mrb[6].mxu0 %vm938_vm2, %v1758_v48 }
 0x2e4   : > { %v1762_v21 = vpop.eup %1761  ;;  %v994_v23 = vadd.f32 %v993_v20, %v992_v50  ;;  %1651 = vmatprep.mubr.msk.f32.mxu0 %vm938_vm2, %v1760_v10  ;;  %v995_v24 = vsel %vm938_vm2, %v1760_v10, 0.0  ;;  %1671 = vmatpush3.bf16.msra.mxu0 %v1749_v9 }
 0x2e5   : > { %v1764_v25 = vpop.eup %1763  ;;  %v997_v27 = vsel %vm938_vm2, %v1762_v21, 0.0  ;;  %1672 = vmatprep.subr.bf16.mxu0 %v1840_v13 }
 0x2e6   : > { %v996_v26 = vadd.f32 %v995_v24, %v994_v23  ;;  %v1766_v28 = vpop.eup %1765  ;;  %v999_v32 = vsel %vm938_vm2, %v1764_v25, 0.0 }
 0x2e7   : > { %1652 = vmatmul.mubr.msk.f32.gmra.mrb[8].mxu0 %vm938_vm2, %v1762_v21  ;;  %v1768_v30 = vpop.eup %1767  ;;  %v1001_v36 = vsel %vm938_vm2, %v1766_v28, 0.0 }
 0x2e8   : > { %v998_v29 = vadd.f32 %v997_v27, %v996_v26  ;;  %1654 = vmatprep.mubr.msk.f32.mxu0 %vm938_vm2, %v1764_v25  ;;  %v1770_v33 = vpop.eup %1769  ;;  %1663 = vmatmul.mubr.msk.f32.vlgmr.msra.gmra.mrb[16].mxu1 %vm938_vm2, %v1768_v30 }
 0x2e9   : > { %1666 = vmatpush3.msk.msra.mxu1 %vm1039_vm3, %v2158_v22  ;;  %v1772_v37 = vpop.eup %1771  ;;  %1667 = vmatprep.mubr.msk.f32.mxu1 %vm1841_vm1, %v1840_v13  ;;  %v1003_v39 = vsel %vm938_vm2, %v1770_v33, 0.0 }
 0x2ea   : > { %v1000_v35 = vadd.f32 %v999_v32, %v998_v29  ;;  %v1005_v43 = vsel %vm938_vm2, %v1772_v37, 0.0  ;;  %1673 = vmatpush3.bf16.msra.mxu0 %v1750_v11 }
 0x2eb   : > { %1655 = vmatmul.mubr.msk.f32.gmra.mrb[10].mxu0 %vm938_vm2, %v1766_v28 }
 0x2ec   : > { %v1002_v38 = vadd.f32 %v1001_v36, %v1000_v35  ;;  %1657 = vmatprep.mubr.msk.f32.mxu0 %vm938_vm2, %v1770_v33 }
 0x2ee   : > { %v1004_v40 = vadd.f32 %v1003_v39, %v1002_v38 }
 0x2ef   : > { %1658 = vmatmul.mubr.msk.f32.gmra.mrb[12].mxu0 %vm938_vm2, %v1772_v37 }
 0x2f0   : > { %v1006_v44 = vadd.f32 %v1005_v43, %v1004_v40  ;;  %1674 = vmatprep.mubr.msk.bf16.mxu0 %vm1841_vm1, %v1840_v13 }
 0x2f2   : > { %v1007_v45 = vrot.slane %v1006_v44, 4 }
 0x2f4   : > { %v1008_v22 = vadd.f32 %v1007_v45, %v1006_v44 }
 0x2f6   : > { %v1009_v46 = vrot.slane %v1008_v22, 2 }
 0x2f8   : > { %v1010_v47 = vadd.f32 %v1009_v46, %v1008_v22 }
 0x2fa   : > { %v1011_v52 = vrot.slane %v1010_v47, 1 }
 0x2fc   : > { %v1012_v53 = vadd.f32 %v1011_v52, %v1010_v47  ;;  %v1376_v47 = vld [vmem:[%s2298_s10] sm:$0x1] }
 0x2fe   : > { %v1013_v54 = vadd.f32 %v1768_v30, %v1012_v53 }
 0x300   : > { %1773 = vrcp.f32 %v1013_v54 }
 0x30a   : > { %v1774_v55 = vpop.eup %1773 }
 0x30b   : > { %1668 = vmatmul.mubr.msk.f32.vlgmr.msra.gmra.mrb[18].mxu1 %vm938_vm2, %v1774_v55 }
 0x3b6   : > { %v1650_v56 = vpop.f32.mrb[6].mxu0 }
 0x3b7   : > { %v1109_v57 = vpop.f32.mrb[7].mxu0 }
 0x3b8   : > { %1156 = vrot.lane.b32.xlu1 %v1109_v57, %s1842_s12 }
 0x3ba   : > { %v1653_v58 = vpop.f32.mrb[8].mxu0 }
 0x3bb   : > { %v1119_v59 = vpop.f32.mrb[9].mxu0  ;;  %v1279_v60 = vpop.f32.mrb[16].mxu1 }
 0x3bc   : > { %1160 = vrot.lane.b32.xlu1 %v1119_v59, %s1842_s12  ;;  %1284 = vrot.lane.b32.xlu0 %v1279_v60, %s1844_s1  ;;  %v1664_v61 = vpop.f32.mrb[17].mxu1 }
 0x3be   : > { %v1656_v63 = vpop.f32.mrb[10].mxu0 }
 0x3bf   : > { %v1129_v0 = vpop.f32.mrb[11].mxu0 }
 0x3c0   : > { %1164 = vrot.lane.b32.xlu1 %v1129_v0, %s1842_s12  ;;  %1158 = vrot.lane.b32.xlu0 %v1650_v56, %s1842_s12 }
 0x3c2   : > { %v1659_v1 = vpop.f32.mrb[12].mxu0 }
 0x3c3   : > { %v1139_v5 = vpop.f32.mrb[13].mxu0 }
 0x3c4   : > { %1168 = vrot.lane.b32.xlu1 %v1139_v5, %s1842_s12  ;;  %1162 = vrot.lane.b32.xlu0 %v1653_v58, %s1842_s12 }
 0x3c8   : > { %1166 = vrot.lane.b32.xlu0 %v1656_v63, %s1842_s12 }
 0x3cc   : > { %1170 = vrot.lane.b32.xlu0 %v1659_v1, %s1842_s12 }
 0x3de   : > { %v1362_v7 = vpop.f32.mrb[18].mxu1 }
 0x3df   : > { %1367 = vrot.lane.b32.xlu0 %v1362_v7, %s1842_s12  ;;  %v1669_v8 = vpop.f32.mrb[19].mxu1  ;;  %s378_s12 = sand.u32 1, %s1829_s18  }
 0x3e0   : > { %s379_s15 = scalar_lea.vmem [#allocation2], %s378_s12  ;;  %s1438_s21 = scalar_lea.sflag [#allocation3], %s378_s12 }
 0x3e1   : > { %s1450_s16 = sshll.u32 %s379_s15, 4  ;;  %s2248_s16 = int_to_ptr.vmem [resolvable:$true] %s1450_s16 }
 0x3e2   : > { %s1775_s22 = scalar_lea.vmem %s2248_s16, 16  ;;  %p1782_p0 = scmp.lt.s32.totalorder %s2248_s16, %s1780_s25 }
 0x3e3   : > { %p1776_p11 = scmp.ne.s32.totalorder %s2248_s16, %s1775_s22  ;;  %p1783_p1 = scmp.lt.s32.totalorder %s1781_s30, %s1775_s22 }
 0x3e5   : > { %p1777_p12 = pnand %p1776_p11, %p1944_p5  ;;  %p1784_p2 = por %p1783_p1, %p1782_p0 }
 0x3e7   : > { %p1778_p13 = pneg %p1777_p12 }
 0x3e9   : > { %p1785_p3 = pnand %p1784_p2, %p1778_p13 }
 0x42a   : > { %v1157_v49 = vpop.permute.xlu1 %1156 }
 0x42b   : > { %v1180_v17 = vmul.f32 %v1157_v49, %v2087_v31 }
 0x42d   : > { %v1189_v13 = vsel %vm1188_vm4, %v1180_v17, 0.0 }
 0x42e   : > { %v1285_v12 = vpop.permute.xlu0 %1284  ;;  %v1161_v62 = vpop.permute.xlu1 %1160 }
 0x42f   : > { %v1287_v14 = vmul.f32 %v1285_v12, %v2052_v6  ;;  %v1182_v18 = vmul.f32 %v1161_v62, %v2101_v41 }
 0x431   : > { %1289 = vrot.lane.b32.xlu1 %v1287_v14, %s1839_s29  ;;  %v1192_v6 = vsel %vm1188_vm4, %v1182_v18, 0.0 }
 0x432   : > { %v1159_v16 = vpop.permute.xlu0 %1158  ;;  %v1165_v10 = vpop.permute.xlu1 %1164 }
 0x433   : > { %v1181_v3 = vmul.f32 %v1159_v16, %v2092_v34  ;;  %v1184_v23 = vmul.f32 %v1165_v10, %v2129_v2 }
 0x435   : > { %v1190_v19 = vsel %vm1188_vm4, %v1181_v3, 0.0  ;;  %v1196_v41 = vsel %vm1188_vm4, %v1184_v23, 0.0 }
 0x436   : > { %v1163_v48 = vpop.permute.xlu0 %1162  ;;  %v1191_v50 = vadd.f32 %v1190_v19, %v1189_v13  ;;  %v1169_v25 = vpop.permute.xlu1 %1168 }
 0x437   : > { %v1183_v20 = vmul.f32 %v1163_v48, %v2104_v42  ;;  %v1186_v28 = vmul.f32 %v1169_v25, %v2141_v15 }
 0x438   : > { %v1193_v21 = vadd.f32 %v1192_v6, %v1191_v50 }
 0x439   : > { %v1194_v34 = vsel %vm1188_vm4, %v1183_v20, 0.0  ;;  %v1200_v42 = vsel %vm1188_vm4, %v1186_v28, 0.0 }
 0x43a   : > { %v1167_v31 = vpop.permute.xlu0 %1166  ;;  %v1195_v24 = vadd.f32 %v1194_v34, %v1193_v21 }
 0x43b   : > { %v1185_v26 = vmul.f32 %v1167_v31, %v2132_v4 }
 0x43c   : > { %v1197_v27 = vadd.f32 %v1196_v41, %v1195_v24 }
 0x43d   : > { %v1198_v29 = vsel %vm1188_vm4, %v1185_v26, 0.0 }
 0x43e   : > { %v1171_v30 = vpop.permute.xlu0 %1170  ;;  %v1199_v32 = vadd.f32 %v1198_v29, %v1197_v27 }
 0x43f   : > { %v1187_v2 = vmul.f32 %v1171_v30, %v2144_v51 }
 0x440   : > { %v1201_v33 = vadd.f32 %v1200_v42, %v1199_v32 }
 0x441   : > { %v1202_v35 = vsel %vm1188_vm4, %v1187_v2, 0.0 }
 0x442   : > { %v1203_v36 = vadd.f32 %v1202_v35, %v1201_v33 }
 0x444   : > { %v1204_v37 = vrot.slane %v1203_v36, 4 }
 0x446   : > { %v1205_v38 = vadd.f32 %v1204_v37, %v1203_v36 }
 0x448   : > { %v1206_v4 = vrot.slane %v1205_v38, 2 }
 0x44a   : > { %v1207_v39 = vadd.f32 %v1206_v4, %v1205_v38 }
 0x44c   : > { %v1208_v40 = vrot.slane %v1207_v39, 1 }
 0x44e   : > { %v1209_v15 = vadd.f32 %v1208_v40, %v1207_v39 }
 0x451   : > { %v1368_v45 = vpop.permute.xlu0 %1367 }
 0x4a3   : > { %v1290_v43 = vpop.permute.xlu1 %1289 }
 0x4a4   : > { %v1292_v44 = vadd.f32 %v1290_v43, %v1209_v15 }
 0x4a6   : > { %v1370_v22 = vmul.f32 %v1368_v45, %v1292_v44 }
 0x4a8   : > { %v1371_v46 = vpack.c.bf16 %v1370_v22, %v1370_v22 }
 0x4aa   : > { %1378 = vrot.lane.b32.xlu1 %v1371_v46, %s1839_s29  ;;  %s2246_s29 = scalar_lea.hbm %s2299_s11, %s1550_s14 }
 0x51c   : > { %v1379_v51 = vpop.permute.xlu1 %1378 }
 0x51d   : > { %1675 = vmatmul.mubr.msk.bf16.vlgmr.msra.gmra.mrb[16].mxu0 %vm438_vm0, %v1379_v51 }
 0x5f0   : > { %v1429_v52 = vpop.f32.mrb[16].mxu0 }
 0x5f1   : > { %v1430_v53 = vadd.f32 %v1429_v52, %v1376_v47  ;;  %v1676_v54 = vpop.f32.mrb[17].mxu0 }
 0x5f2   : > { %v1432_v55 = vpop.f32.mrb[18].mxu0 }
 0x5f3   : > { %v1677_v56 = vpop.f32.mrb[19].mxu0  ;;  %1436 = vst.msk [vmem:[%s379_s15] sm:$0x1] %vm1435_vm5, %v1430_v53 }
 0x5f4   : > { %1788 = shalt.err (!%p1785_p3)
}
 0x5f5   : > { %s1789_s12 = scalar_lea.hbm %s2246_s29, 16  ;;  %s1793_s15 = scalar_lea.hbm %s2299_s11, 32 }
 0x5f6   : > { %p1790_p4 = scmp.ne.s32.totalorder %s2246_s29, %s1789_s12  ;;  %p1794_p9 = scmp.lt.u32.totalorder %s2246_s29, %s2299_s11 }
 0x5f7   : > { %p1795_p10 = scmp.lt.u32.totalorder %s1793_s15, %s1789_s12  ;;  %p1797_p12 = scmp.lt.u32.totalorder %s1789_s12, %s2246_s29 }
 0x5f8   : > { %p1791_p7 = pnand %p1790_p4, %p1944_p5 }
 0x5f9   : > { %p1796_p11 = por %p1795_p10, %p1794_p9 }
 0x5fa   : > { %p1792_p8 = pneg %p1791_p7 }
 0x5fb   : > { %p1798_p13 = por %p1797_p12, %p1796_p11 }
 0x5fd   : > { %p1799_p0 = pnand %p1798_p13, %p1792_p8 }
 0x5ff   : > { %1802 = shalt.err (!%p1799_p0)
}
 0x600   : > { %1696 = dma.vmem_to_hbm [thread:$0]  (%p1944_p5), %s2248_s16, 16, %s2246_s29, %s1438_s21  }
 0x601 PF: > { %p1702_p1 = scmp.ge.s32.totalorder %s1837_s20, 2  ;;  %s1462_s22 = sand.u32 1, %s1825_s17  }
 0x602   : > { %s1463_s24 = scalar_lea.sflag [#allocation3], %s1462_s22 }
 0x603   : > { %p1699_p2 = pnand %p1702_p1, %p1948_p6 }
 0x605   : > { %1820 = dma.done.wait (!%p1699_p2), %s1463_s24, 16  }
 0x606   : > { %1822 = vsyncadd (!%p1699_p2), %s1463_s24, 4294967280  ;;  %s2305_s25 = sld [smem:[#allocation5_spill]]  ;;  %p21_p3 = scmp.ge.s32.totalorder %s1931_s23, 4  }
 0x607   : > { %s2306_s17 = smov %s1829_s18  ;;  %s2307_s18 = smov %s1833_s19 }
 0x608   : > { %s2309_s20 = smov %s1931_s23  ;;  %23 = sbr.rel (!%p21_p3) target bundleno = 5 (0x5), region = 99 }
 0x60c   : > { %s2308_s19 = smov %s2305_s25 }
 0x60f   :  { %1467 = vsyncpa [#allocation3], 1 }
 0x610   :  { %1469 = vsyncpa [#allocation3 + $0x1], 1 }

</bundles_post_ra>
